<compile_context>
chip_gen: v7x
topology: tpu7x:2x2x1
jax: 0.10.0
libtpu: 0.0.40
codegen_flags: <defaults>
</compile_context>

<pallas_src>
import math

import jax
import jax.numpy as jnp
from jax.experimental import pallas as pl
from jax.experimental.pallas import tpu as pltpu

_LANE = 128


# --------------------------------------------------------------------------- #
# Kernels
# --------------------------------------------------------------------------- #
def _add_pe_2d_kernel(x_ref, pe_ref, o_ref):
    # x_ref: (Bb, Lt), pe_ref: (1, Lt) -> broadcast add over the batch rows.
    o_ref[...] = x_ref[...].astype(o_ref.dtype) + pe_ref[...].astype(o_ref.dtype)


def _add_pe_3d_kernel(x_ref, pe_ref, o_ref):
    # x_ref: (Bb, Tt, E), pe_ref: (Tt, E) -> broadcast add over the batch dim.
    o_ref[...] = (x_ref[...].astype(o_ref.dtype)
                  + pe_ref[...][None, :, :].astype(o_ref.dtype))


# --------------------------------------------------------------------------- #
# Helpers
# --------------------------------------------------------------------------- #
def _round_up(x, m):
    return ((x + m - 1) // m) * m


def _sublane(itemsize):
    # Second-minor tile multiple per dtype width (f32: 8, bf16: 16, int8: 32).
    return 8 * max(1, 4 // int(itemsize))


def build_sinusoid_pe(embed_dim, max_len=100, dtype=jnp.float32):
    """(max_len, embed_dim) sinusoid table matching the PyTorch __init__.

    Torch stores pe.permute(1, 0) and the forward applies .T again, so the
    table that is actually added is exactly this (max_len, embed_dim) array.
    """
    position = jnp.arange(max_len, dtype=jnp.float32)[:, None]            # (L, 1)
    div_term = jnp.exp(jnp.arange(0, embed_dim, 2, dtype=jnp.float32)
                       * (-math.log(10000.0) / embed_dim))                # (ceil(E/2),)
    angles = position * div_term                                          # (L, ceil(E/2))
    pe = jnp.zeros((max_len, embed_dim), jnp.float32)
    pe = pe.at[:, 0::2].set(jnp.sin(angles))
    # floor(E/2) cos columns (torch errors on odd E; we drop the extra column).
    pe = pe.at[:, 1::2].set(jnp.cos(angles[:, : embed_dim // 2]))
    return pe.astype(dtype)


def _choose_blocks_2d(B, L, x_item, out_item, pe_item, target_bytes):
    """Blocks for the flattened (B, L=T*E) layout."""
    sub = max(_sublane(x_item), _sublane(out_item))
    # Lane block: full L when modest, else a 128-multiple chunk.  Cap so the
    # (1, Lt) pe block (sublane-padded to a full 8-row group in VMEM) stays
    # around <= 1 MiB per buffer.
    lt_cap = max(_LANE,
                 ((1 << 20) // (_sublane(pe_item) * pe_item)) // _LANE * _LANE)
    Lt = L if L <= lt_cap else lt_cap
    bytes_per_row = _round_up(Lt, _LANE) * max(x_item, out_item)
    want = max(1, target_bytes // bytes_per_row)
    if want >= B:
        Bb = B
    else:
        Bb = min(B, max(sub, (want // sub) * sub))
    return Bb, Lt


def _choose_blocks_3d(B, T, E, x_item, out_item, pe_item, target_bytes):
    """Blocks for the natural (B, T, E) layout (E already a lane multiple)."""
    sub = max(_sublane(x_item), _sublane(out_item), _sublane(pe_item))
    row_bytes = _round_up(E, _LANE) * max(x_item, out_item)
    if T * row_bytes <= max(target_bytes // 2, sub * row_bytes):
        Tt = T
    else:
        Tt = min(T, max(sub, ((target_bytes // 2) // row_bytes) // sub * sub))
    per_batch = _round_up(Tt, sub) * row_bytes
    Bb = min(B, max(1, target_bytes // per_batch))
    return Bb, Tt


# --------------------------------------------------------------------------- #
# Public entry point
# --------------------------------------------------------------------------- #
def positional_encoding(x, pe, *, small_input_threshold_bytes=1 << 20,
                        target_tile_bytes=4 << 20):
    """x: (B, T, E); pe: (max_len, E). Returns x + pe[:T, :] broadcast over B."""
    B, T, E = x.shape
    assert T <= pe.shape[0] and E == pe.shape[1], "pe table too small for input"

    out_dtype = jnp.promote_types(x.dtype, pe.dtype)
    pe_slice = pe[:T, :]                               # static slice at trace time

    x_item = jnp.dtype(x.dtype).itemsize
    pe_item = jnp.dtype(pe.dtype).itemsize
    out_item = jnp.dtype(out_dtype).itemsize

    total_bytes = B * T * E * (x_item + out_item) + T * E * pe_item
    if total_bytes < small_input_threshold_bytes:
        # pallas_call dispatch overhead dominates; let XLA fuse the add.
        return x + pe_slice

    cost = pl.CostEstimate(flops=B * T * E, transcendentals=0,
                           bytes_accessed=total_bytes)

    if E % _LANE == 0:
        # Natural layout already lane-dense: tile batch and sequence.
        Bb, Tt = _choose_blocks_3d(B, T, E, x_item, out_item, pe_item,
                                   target_tile_bytes)
        grid = (pl.cdiv(B, Bb), pl.cdiv(T, Tt))
        sub = max(_sublane(x_item), _sublane(out_item), _sublane(pe_item))
        t_pad = _round_up(Tt, sub)
        e_pad = _round_up(E, _LANE)
        vmem_need = 2 * (Bb * t_pad * e_pad * x_item
                         + Bb * t_pad * e_pad * out_item
                         + t_pad * e_pad * pe_item)
        vmem_limit = int(min(max(16 << 20, vmem_need + (4 << 20)), 64 << 20))
        return pl.pallas_call(
            _add_pe_3d_kernel,
            out_shape=jax.ShapeDtypeStruct((B, T, E), out_dtype),
            grid=grid,
            in_specs=[
                pl.BlockSpec((Bb, Tt, E), lambda b, t: (b, t, 0)),
                pl.BlockSpec((Tt, E), lambda b, t: (t, 0)),
            ],
            out_specs=pl.BlockSpec((Bb, Tt, E), lambda b, t: (b, t, 0)),
            compiler_params=pltpu.CompilerParams(
                dimension_semantics=("parallel", "parallel"),
                vmem_limit_bytes=vmem_limit),
            cost_estimate=cost,
        )(x, pe_slice)

    # E not a lane multiple: flatten (T, E) into the lane dim so every vector
    # store is a full, unmasked 128-lane vst.  Reshapes are layout-preserving.
    L = T * E
    x2d = x.reshape(B, L)
    pe2d = pe_slice.reshape(1, L)
    Bb, Lt = _choose_blocks_2d(B, L, x_item, out_item, pe_item, target_tile_bytes)
    grid = (pl.cdiv(B, Bb), pl.cdiv(L, Lt))
    l_pad = _round_up(Lt, _LANE)
    vmem_need = 2 * (_round_up(Bb, _sublane(x_item)) * l_pad * x_item
                     + _round_up(Bb, _sublane(out_item)) * l_pad * out_item
                     + _sublane(pe_item) * l_pad * pe_item)
    vmem_limit = int(min(max(16 << 20, vmem_need + (4 << 20)), 64 << 20))
    out2d = pl.pallas_call(
        _add_pe_2d_kernel,
        out_shape=jax.ShapeDtypeStruct((B, L), out_dtype),
        grid=grid,
        in_specs=[
            pl.BlockSpec((Bb, Lt), lambda b, l: (b, l)),
            pl.BlockSpec((1, Lt), lambda b, l: (0, l)),
        ],
        out_specs=pl.BlockSpec((Bb, Lt), lambda b, l: (b, l)),
        compiler_params=pltpu.CompilerParams(
            dimension_semantics=("parallel", "parallel"),
            vmem_limit_bytes=vmem_limit),
        cost_estimate=cost,
    )(x2d, pe2d)
    return out2d.reshape(B, T, E)


def reference_positional_encoding(x, pe):
    """Plain-JAX reference mirroring the PyTorch forward exactly."""
    T = x.shape[1]
    return x + pe[:T, :]


if __name__ == "__main__":
    key = jax.random.PRNGKey(0)
    k1, k2, k3 = jax.random.split(key, 3)

    # --- Case 1: module's natural small shape (B, T, E) = (2, 8, 32), f32. ---
    # E % 128 != 0 -> lane-dense flattened path.  Force the Pallas path.
    B, T, E, MAX_LEN = 2, 8, 32, 100
    x1 = jax.random.normal(k1, (B, T, E), dtype=jnp.float32)
    pe1 = build_sinusoid_pe(E, MAX_LEN)
    out1 = jax.block_until_ready(
        positional_encoding(x1, pe1, small_input_threshold_bytes=0))
    ref1 = reference_positional_encoding(x1, pe1)
    assert out1.shape == ref1.shape and out1.dtype == ref1.dtype
    assert jnp.allclose(out1, ref1, atol=1e-6, rtol=1e-6), "case 1 mismatch"

    # --- Case 2: E % 128 == 0 (3-D path) + mixed precision (bf16 x, f32 pe). ---
    B2, T2, E2 = 3, 24, 128
    x2 = jax.random.normal(k2, (B2, T2, E2), dtype=jnp.bfloat16)
    pe2 = build_sinusoid_pe(E2, 64)
    out2 = jax.block_until_ready(
        positional_encoding(x2, pe2, small_input_threshold_bytes=0))
    ref2 = reference_positional_encoding(x2, pe2)      # promotes to f32
    assert out2.shape == ref2.shape and out2.dtype == ref2.dtype
    assert jnp.allclose(out2, ref2, atol=1e-6, rtol=1e-6), "case 2 mismatch"

    # --- Case 3: ragged batch blocks (B not divisible by the block size). ---
    B3, T3, E3 = 10, 16, 32
    x3 = jax.random.normal(k3, (B3, T3, E3), dtype=jnp.float32)
    pe3 = build_sinusoid_pe(E3, 32)
    out3 = jax.block_until_ready(
        positional_encoding(x3, pe3, small_input_threshold_bytes=0,
                            target_tile_bytes=8192))   # force Bb=8 < B3
    ref3 = reference_positional_encoding(x3, pe3)
    assert out3.shape == ref3.shape and out3.dtype == ref3.dtype
    assert jnp.allclose(out3, ref3, atol=1e-6, rtol=1e-6), "case 3 mismatch"

    print("KERNEL_OK")
</pallas_src>

<mosaic_0001>
module attributes {stable_mosaic.version = 11 : i64} {
  func.func @_add_pe_2d_kernel(%arg0: i32, %arg1: i32, %arg2: memref<2x256xf32, #tpu.memory_space<vmem>>, %arg3: memref<1x256xf32, #tpu.memory_space<vmem>>, %arg4: memref<2x256xf32, #tpu.memory_space<vmem>>) attributes {dimension_semantics = [#tpu.dimension_semantics<parallel>, #tpu.dimension_semantics<parallel>], iteration_bounds = array<i64: 1, 1>, scalar_prefetch = 0 : i64, scratch_operands = 0 : i64, tpu.core_type = #tpu.core_type<tc>, window_params = [{transform_indices = @transform_0, window_bounds = array<i64: 2, 256>}, {transform_indices = @transform_1, window_bounds = array<i64: 1, 256>}, {transform_indices = @transform_2, window_bounds = array<i64: 2, 256>}]} {
    %c0 = arith.constant 0 : index
    %c0_0 = arith.constant 0 : index
    %0 = vector.load %arg2[%c0, %c0_0] : memref<2x256xf32, #tpu.memory_space<vmem>>, vector<2x256xf32>
    %c0_1 = arith.constant 0 : index
    %c0_2 = arith.constant 0 : index
    %1 = vector.load %arg3[%c0_1, %c0_2] : memref<1x256xf32, #tpu.memory_space<vmem>>, vector<1x256xf32>
    %2 = vector.broadcast %1 : vector<1x256xf32> to vector<2x256xf32>
    %3 = arith.addf %0, %2 : vector<2x256xf32>
    %c0_3 = arith.constant 0 : index
    %c0_4 = arith.constant 0 : index
    %4 = vector.load %arg4[%c0_3, %c0_4] : memref<2x256xf32, #tpu.memory_space<vmem>>, vector<2x256xf32>
    tpu.vector_store %arg4[%c0_3, %c0_4], %3 {strides = array<i32>} : memref<2x256xf32, #tpu.memory_space<vmem>>, vector<2x256xf32>,
    return
  }
  func.func @transform_0(%arg0: i32, %arg1: i32) -> (i32, i32) {
    %c0_i32 = arith.constant 0 : i32
    return %arg0, %arg1 : i32, i32
  }
  func.func @transform_1(%arg0: i32, %arg1: i32) -> (i32, i32) {
    %c0_i32 = arith.constant 0 : i32
    %c0_i32_0 = arith.constant 0 : i32
    return %c0_i32, %arg1 : i32, i32
  }
  func.func @transform_2(%arg0: i32, %arg1: i32) -> (i32, i32) {
    %c0_i32 = arith.constant 0 : i32
    return %arg0, %arg1 : i32, i32
  }
}

</mosaic_0001>

<bundles_post_ra>
// kernel: tpu_custom_call.1
= control target key start
LH: loop header
LB: loop body
LE: loop exit
PB: predicated region body
PF: predicated region fallthrough
CT: control target
= control target key end

     0   :  { %7 = vsyncpa [#allocation3], 0  ;;  %s157_s0 = inlined_call_operand.hbm [shape: f32[2,256], index: 0, kind: input, shape index: {}]   ;;  %s158_s1 = inlined_call_operand.vmem [shape: f32[1,256], index: 1, kind: input, shape index: {}]   ;;  %s159_s2 = inlined_call_operand.hbm [shape: f32[2,256], index: 2, kind: output, shape index: {}]  }
   0x1   :  { %8 = vsyncpa [#allocation4], 0  ;;  %s112_s9 = smov [#allocation2]   ;;  %s64_s13 = scalar_lea.hbm %s157_s0, 64 }
   0x2   :  { %s15_s10 = sshll.u32 %s112_s9, 4  ;;  %p65_p0 = scmp.ne.s32.totalorder %s157_s0, %s64_s13  ;;  %s16_s10 = int_to_ptr.vmem [resolvable:$true] %s15_s10 }
   0x3   :  { %p68_p1 = scmp.lt.u32.totalorder %s64_s13, %s157_s0 }
   0x5   :  { %p70_p2 = pnand %p68_p1, %p65_p0 }
   0x7   :  { %73 = shalt.err (!%p70_p2)
}
   0x8   :  { %s74_s18 = scalar_lea.vmem %s16_s10, 64  ;;  %p79_p4 = scmp.lt.s32.totalorder %s16_s10, %s16_s10 }
   0x9   :  { %p75_p3 = scmp.ne.s32.totalorder %s16_s10, %s74_s18  ;;  %p80_p5 = scmp.lt.s32.totalorder %s74_s18, %s74_s18 }
   0xb   :  { %p81_p6 = por %p80_p5, %p79_p4 }
   0xd   :  { %p82_p7 = pnand %p81_p6, %p75_p3 }
   0xf   :  { %85 = shalt.err (!%p82_p7)
}
  0x10   :  { %18 = dma.hbm_to_vmem [thread:$0]  %s157_s0, 64, %s16_s10, [#allocation3]  }
  0x11   :  { %108 = dma.done.wait [#allocation3], 64  }
  0x12   :  { %109 = vsyncadd [#allocation3], 4294967232  ;;  %v27_v0 = vlaneseq  ;;  %v113_v1 = vmov 1983009808   ;;  %v25_v7 = vld [vmem:[%s158_s1] sm:$0x3] }
  0x13   :  { %v37_v2 = vunpack.c.l.s4 %v113_v1  ;;  %v24_v12 = vld [vmem:[#allocation2] sm:$0xf]  ;;  %s114_s23 = smov [#allocation5]  }
  0x14   :  { %v28_v3 = vshrl.u32 %v27_v0, 7  ;;  %s52_s0 = sshll.u32 %s114_s23, 4  ;;  %s53_s0 = int_to_ptr.vmem [resolvable:$true] %s52_s0 }
  0x15   :  { %v38_v6 = vunpack.c.0.s8 %v37_v2  ;;  %s86_s24 = scalar_lea.vmem %s53_s0, 64  ;;  %p91_p9 = scmp.lt.s32.totalorder %s53_s0, %s53_s0 }
  0x16   :  { %v29_v4 = vsub.s32 0, %v28_v3  ;;  %v33_v5 = vsub.s32 1, %v28_v3  ;;  %p87_p8 = scmp.ne.s32.totalorder %s53_s0, %s86_s24  ;;  %p92_p10 = scmp.lt.s32.totalorder %s86_s24, %s86_s24 }
  0x17   :  { %v41_v10 = vsub.s32 %v38_v6, %v28_v3 }
  0x18   :  { %v30_v8 = vrot.slane %v25_v7, %v29_v4  ;;  %v34_v9 = vrot.slane %v25_v7, %v33_v5  ;;  %p93_p11 = por %p92_p10, %p91_p9 }
  0x1a   :  { %v35_v11 = vcombine.low %v30_v8, %v34_v9  ;;  %p94_p12 = pnand %p93_p11, %p87_p8 }
  0x1c   :  { %v42_v13 = vrot.slane %v35_v11, %v41_v10 }
  0x1e   :  { %v44_v14 = vadd.f32 %v42_v13, %v24_v12 }
  0x20   :  { %45 = vst [vmem:[#allocation5] sm:$0xf] %v44_v14 }
  0x21   :  { %97 = shalt.err (!%p94_p12)
}
  0x22   :  { %s98_s26 = scalar_lea.hbm %s159_s2, 64 }
  0x23   :  { %p99_p13 = scmp.ne.s32.totalorder %s159_s2, %s98_s26  ;;  %p102_p0 = scmp.lt.u32.totalorder %s98_s26, %s159_s2 }
  0x25   :  { %p104_p1 = pnand %p102_p0, %p99_p13 }
  0x27   :  { %107 = shalt.err (!%p104_p1)
}
  0x28   :  { %55 = dma.vmem_to_hbm [thread:$0]  %s53_s0, 64, %s159_s2, [#allocation4]  }
  0x29   :  { %110 = dma.done.wait [#allocation4], 64  }
  0x2a   :  { %111 = vsyncadd [#allocation4], 4294967232 }
  0x2b   :  { %59 = vsyncpa [#allocation3], 1 }
  0x2c   :  { %60 = vsyncpa [#allocation4], 1 }

</bundles_post_ra>
